<compile_context>
chip_gen: v6e
topology: v6e:2x2x1
jax: 0.10.0
libtpu: 0.0.40
codegen_flags: <defaults>
</compile_context>

<pallas_src>
import functools

import jax
import jax.numpy as jnp
from jax.experimental import pallas as pl
from jax.experimental.pallas import tpu as pltpu


def _round_up(x, m):
    return ((x + m - 1) // m) * m


@functools.lru_cache(maxsize=None)
def _chip_config():
    """(tm_cap, vmem_limit_bytes) chosen per TPU generation."""
    tm_cap, vmem_limit = 256, 48 * 1024 * 1024          # v7x-safe (64 MiB VMEM)
    try:
        info = pltpu.get_tpu_info()
        vmem_cap = int(getattr(info, "vmem_capacity_bytes", 0))
        if vmem_cap >= 100 * 1024 * 1024:                # v5e / v6e (128 MiB VMEM)
            tm_cap, vmem_limit = 512, 96 * 1024 * 1024
    except Exception:
        pass
    return tm_cap, vmem_limit


def _pick_tm(M, cap):
    """Prefer an M tile that divides M exactly (avoids a full-A pad copy)."""
    for t in (cap, 512, 256, 128, 64, 32, 16, 8):
        if t <= cap and M % t == 0:
            return t
    return min(cap, _round_up(M, 8))


# ----------------------------------------------------------------------------
# Pallas kernel: single-shot (A @ W) -> +bias -> LeakyReLU -> * scale -> store
# ----------------------------------------------------------------------------
def _matmul_bias_act_kernel(a_ref, w_ref, b_ref, o_ref, *, slope, scale):
    acc = jnp.dot(a_ref[...], w_ref[...], preferred_element_type=jnp.float32)
    acc = acc + b_ref[...]                               # (tm,tn) + (1,tn)
    if slope is not None:
        acc = jnp.where(acc >= 0.0, acc, slope * acc)
    if scale != 1.0:
        acc = acc * scale
    o_ref[...] = acc.astype(o_ref.dtype)


def matmul_bias_act(a, w, b, *, slope=0.1, scale=1.0, out_dtype=jnp.bfloat16):
    """Batched fused GEMM: act(a[g] @ w[g] + b[g]) * scale.

    a: (G, M, K) or (M, K); w: (G, K, N) or (K, N); b: (G, N) / (N,) / None.
    K and N must already be multiples of 128 (padded by the caller).
    Returns (G, M, N) in out_dtype.  Operands run bf16 on the MXU, f32 math.
    """
    if a.ndim == 2:
        a = a[None]
        w = w[None]
        if b is not None and b.ndim == 1:
            b = b[None]
    G, M, K = a.shape
    _, K2, N = w.shape
    assert K == K2 and K % 128 == 0 and N % 128 == 0

    tm_cap, vmem_limit = _chip_config()
    tm = _pick_tm(M, tm_cap)
    M_pad = _round_up(M, tm)
    if M_pad != M:
        # Rare fallback (tiny / odd M); padded rows are garbage and are sliced
        # off below BEFORE any reshape by the caller.
        a = jnp.pad(a, ((0, 0), (0, M_pad - M), (0, 0)))
    Mt = M_pad // tm

    # When the layer has a single (g, M-tile) unit of work, split N into
    # >=256-wide tiles so v7x's second TensorCore gets independent work.
    if G * Mt >= 2 or N < 512 or N % 256 != 0:
        tn = N
    else:
        tn = 256
    Nt = N // tn

    if b is None:
        b = jnp.zeros((G, N), jnp.float32)
    b3 = b.reshape(G, 1, N).astype(jnp.float32)

    a = a.astype(jnp.bfloat16)
    w = w.astype(jnp.bfloat16)

    kern = functools.partial(_matmul_bias_act_kernel, slope=slope, scale=scale)
    out = pl.pallas_call(
        kern,
        out_shape=jax.ShapeDtypeStruct((G, M_pad, N), out_dtype),
        grid_spec=pltpu.PrefetchScalarGridSpec(
            num_scalar_prefetch=0,
            # M innermost: weight/bias block indices don't change across M
            # tiles, so their DMAs are issued once and the slab stays resident.
            grid=(G, Nt, Mt),
            in_specs=[
                pl.BlockSpec((None, tm, K), lambda g, j, i: (g, i, 0)),   # A
                pl.BlockSpec((None, K, tn), lambda g, j, i: (g, 0, j)),   # W
                pl.BlockSpec((None, 1, tn), lambda g, j, i: (g, 0, j)),   # bias
            ],
            out_specs=pl.BlockSpec((None, tm, tn), lambda g, j, i: (g, i, j)),
        ),
        compiler_params=pltpu.CompilerParams(
            dimension_semantics=("parallel", "parallel", "parallel"),
            vmem_limit_bytes=vmem_limit,
        ),
    )(a, w, b3)
    if M_pad != M:
        out = out[:, :M]
    return out


# ----------------------------------------------------------------------------
# JAX glue: im2col (K-pad folded in), conv / batched subpixel conv-transpose
# ----------------------------------------------------------------------------
def im2col(x, K, stride, pad, k_pad_to=None):
    """x: (B,H,W,C) -> (B,Ho,Wo,K*K*C [padded to k_pad_to]) (ky,kx,c) order."""
    if pad > 0:
        x = jnp.pad(x, ((0, 0), (pad, pad), (pad, pad), (0, 0)))
    B, Hp, Wp, C = x.shape
    Ho = (Hp - K) // stride + 1
    Wo = (Wp - K) // stride + 1
    cols = []
    for ky in range(K):
        for kx in range(K):
            cols.append(x[:, ky:ky + stride * (Ho - 1) + 1:stride,
                            kx:kx + stride * (Wo - 1) + 1:stride, :])
    Kdim = K * K * C
    if k_pad_to is not None and k_pad_to > Kdim:
        # Fold the K-pad into the single concat (no extra full-A pad copy).
        cols.append(jnp.zeros((B, Ho, Wo, k_pad_to - Kdim), x.dtype))
    patches = jnp.concatenate(cols, axis=-1)
    return patches, Ho, Wo


def _conv_gemm(x, w_hwio, b, *, stride, pad, slope, scale, out_dtype):
    """x: (B,H,W,Cin) NHWC.  w_hwio: (Kh,Kw,Cin,Cout) in (ky,kx,ci) order."""
    Kh, Kw, Cin, Cout = w_hwio.shape
    B = x.shape[0]
    Kdim = Kh * Kw * Cin
    K_pad = _round_up(Kdim, 128)
    N_pad = _round_up(Cout, 128)

    if Kh == 1 and Kw == 1 and pad == 0:
        # 1x1 conv: no im2col, just a strided slice + reshape.
        xs = x[:, ::stride, ::stride, :]
        Ho, Wo = xs.shape[1], xs.shape[2]
        A = xs.reshape(B * Ho * Wo, Cin)
        if K_pad != Kdim:
            A = jnp.pad(A, ((0, 0), (0, K_pad - Kdim)))
    else:
        assert Kh == Kw
        patches, Ho, Wo = im2col(x, Kh, stride, pad, k_pad_to=K_pad)
        A = patches.reshape(B * Ho * Wo, K_pad)

    Wm = w_hwio.reshape(Kdim, Cout)
    if K_pad != Kdim:
        Wm = jnp.pad(Wm, ((0, K_pad - Kdim), (0, 0)))
    if N_pad != Cout:
        Wm = jnp.pad(Wm, ((0, 0), (0, N_pad - Cout)))
        if b is not None:
            b = jnp.pad(b, (0, N_pad - Cout))

    out = matmul_bias_act(A, Wm, b, slope=slope, scale=scale,
                          out_dtype=out_dtype)[0]
    if N_pad != Cout:
        # TODO(synk): only conv1 (64 -> 128 pad) hits this; the un-pad slice is
        # one extra HBM round trip of conv1's output — carrying the padded
        # layout forward would double conv2's K, so the slice is kept.
        out = out[:, :Cout]
    return out.reshape(B, Ho, Wo, Cout)


def conv2d(x, w, b, *, stride, pad, slope=0.1, scale=1.0, out_dtype=jnp.bfloat16):
    """x NHWC, w: (Cout,Cin,K,K) PyTorch layout, b: (Cout,) or None."""
    w_hwio = jnp.transpose(w, (2, 3, 1, 0))              # (K,K,Cin,Cout)
    return _conv_gemm(x, w_hwio, b, stride=stride, pad=pad,
                      slope=slope, scale=scale, out_dtype=out_dtype)


def deconv2d(x, wt, *, slope=0.1, out_dtype=jnp.bfloat16):
    """ConvTranspose2d(k=4, s=2, p=1, bias=False) + LeakyReLU(0.1) via subpixel
    decomposition; all 4 parity GEMMs run in ONE pallas_call (G=4 grid axis).
    x: (B,H,W,Cin) NHWC.  wt: (Cin,Cout,4,4) PyTorch ConvTranspose2d layout."""
    Cin, Cout, K, _ = wt.shape
    assert K == 4
    B, H, W, _ = x.shape
    Kd = 4 * Cin
    assert Kd % 128 == 0 and Cout % 128 == 0
    # parity -> (transposed-conv taps in forward-conv order, (pad_before, pad_after))
    cfg = {0: ((3, 1), (1, 0)), 1: ((2, 0), (0, 1))}
    a_parts, w_parts = [], []
    for py in (0, 1):
        kys, (pad_t, pad_b) = cfg[py]
        for px in (0, 1):
            kxs, (pad_l, pad_r) = cfg[px]
            w_sub = jnp.take(wt, jnp.array(kys), axis=2)
            w_sub = jnp.take(w_sub, jnp.array(kxs), axis=3)      # (Cin,Cout,2,2)
            w_sub = jnp.transpose(w_sub, (2, 3, 0, 1))           # (2,2,Cin,Cout)
            w_parts.append(w_sub.reshape(Kd, Cout))
            xp = jnp.pad(x, ((0, 0), (pad_t, pad_b), (pad_l, pad_r), (0, 0)))
            patches, Ho, Wo = im2col(xp, 2, 1, 0)                # Ho=H, Wo=W
            a_parts.append(patches.reshape(B * Ho * Wo, Kd))
    A = jnp.stack(a_parts, axis=0)                               # (4, M, Kd)
    Wm = jnp.stack(w_parts, axis=0)                              # (4, Kd, Cout)
    out = matmul_bias_act(A, Wm, None, slope=slope, scale=1.0,
                          out_dtype=out_dtype)                   # (4, M, Cout)
    parts = out.reshape(4, B, H, W, Cout)
    # Interleave parities: out[:, 2m+py, 2n+px] = parts[2*py+px][:, m, n]
    out = jnp.stack([jnp.stack([parts[0], parts[1]], axis=3),
                     jnp.stack([parts[2], parts[3]], axis=3)], axis=2)
    return out.reshape(B, 2 * H, 2 * W, Cout)


def crop_like(x, target):
    """x, target: NHWC."""
    if x.shape[1:3] == target.shape[1:3]:
        return x
    return x[:, :target.shape[1], :target.shape[2], :]


# ----------------------------------------------------------------------------
# Deterministic parameter initialization (synthetic, PyTorch-shaped weights)
# ----------------------------------------------------------------------------
def _init_conv(key, cout, cin, k, bias=True):
    wkey, bkey = jax.random.split(key)
    fan_in = cin * k * k
    bound = 1.0 / (fan_in ** 0.5)
    w = jax.random.uniform(wkey, (cout, cin, k, k), jnp.float32, -bound, bound)
    b = (jax.random.uniform(bkey, (cout,), jnp.float32, -bound, bound)
         if bias else jnp.zeros((cout,), jnp.float32))
    return w, b


def _init_deconv(key, cin, cout, k):
    fan_in = cin * k * k
    bound = 1.0 / (fan_in ** 0.5)
    # PyTorch ConvTranspose2d weight layout: (Cin, Cout, K, K), bias=False
    return jax.random.uniform(key, (cin, cout, k, k), jnp.float32, -bound, bound)


def init_params(key):
    ks = jax.random.split(key, 8)
    p = {}
    p["conv1"] = _init_conv(ks[0], 64, 6, 7)
    p["conv2"] = _init_conv(ks[1], 128, 64, 5)
    p["conv3"] = _init_conv(ks[2], 256, 128, 5)
    p["conv4"] = _init_conv(ks[3], 512, 256, 1)
    p["conv4_1"] = _init_conv(ks[4], 512, 512, 3)
    p["deconv3"] = _init_deconv(ks[5], 512, 256, 4)
    p["deconv2"] = _init_deconv(ks[6], 512, 128, 4)
    # TODO(synk): reference declares nn.Conv2d(128, 128, ...) for `out`, but it
    # is applied to the 256-channel concat2 (shape bug in the PyTorch module);
    # widened in_channels to 256 so the forward pass is runnable.
    p["out"] = _init_conv(ks[7], 128, 256, 1)
    return p


# ----------------------------------------------------------------------------
# Forward pass (eval mode: returns flow2 * div_flow, like module.eval())
# ----------------------------------------------------------------------------
def flownet_encoder_refine(inputs, params, *, rgb_max=255.0, div_flow=20.0):
    """inputs: (B, 3, 2, H, W) float32, like the PyTorch module. Returns NCHW f32."""
    B, C, _, H, W = inputs.shape
    rgb_mean = inputs.reshape(B, C, -1).mean(axis=-1).reshape(B, C, 1, 1, 1)
    x = (inputs - rgb_mean) / rgb_max
    x = jnp.concatenate([x[:, :, 0], x[:, :, 1]], axis=1)            # (B, 6, H, W)
    x = jnp.transpose(x, (0, 2, 3, 1)).astype(jnp.bfloat16)          # NHWC bf16

    out_conv1 = conv2d(x, *params["conv1"], stride=2, pad=3)
    out_conv2 = conv2d(out_conv1, *params["conv2"], stride=2, pad=2)
    out_conv3 = conv2d(out_conv2, *params["conv3"], stride=2, pad=2)
    out_conv4 = conv2d(out_conv3, *params["conv4"], stride=2, pad=0)
    out_conv4 = conv2d(out_conv4, *params["conv4_1"], stride=1, pad=1)

    out_deconv3 = crop_like(deconv2d(out_conv4, params["deconv3"]), out_conv3)
    concat3 = jnp.concatenate([out_conv3, out_deconv3], axis=-1)     # 512 ch
    out_deconv2 = crop_like(deconv2d(concat3, params["deconv2"]), out_conv2)
    concat2 = jnp.concatenate([out_conv2, out_deconv2], axis=-1)     # 256 ch

    # `out` conv (1x1, stride 2, bias, no activation); div_flow scale fused
    # into the Pallas kernel (eval-mode semantics: flow2 * div_flow).
    flow = conv2d(concat2, *params["out"], stride=2, pad=0,
                  slope=None, scale=float(div_flow), out_dtype=jnp.float32)

    # nn.functional.interpolate(scale_factor=2)  (default 'nearest')
    flow = jnp.repeat(jnp.repeat(flow, 2, axis=1), 2, axis=2)

    return jnp.transpose(flow, (0, 3, 1, 2))   # back to NCHW


if __name__ == "__main__":
    key = jax.random.PRNGKey(0)
    k_in, k_p = jax.random.split(key)

    B, H, W = 2, 16, 16
    inputs = jax.random.uniform(k_in, (B, 3, 2, H, W), jnp.float32, 0.0, 255.0)
    params = init_params(k_p)

    out = flownet_encoder_refine(inputs, params, rgb_max=255.0, div_flow=20.0)
    out = jax.block_until_ready(out)

    assert out.shape == (B, 128, 4, 4), out.shape
    assert out.dtype == jnp.float32
    assert bool(jnp.all(jnp.isfinite(out)))
    print("KERNEL_OK")
</pallas_src>

<mosaic_0001>
module attributes {stable_mosaic.version = 11 : i64} {
  func.func @_matmul_bias_act_kernel(%arg0: i32, %arg1: i32, %arg2: i32, %arg3: memref<1x128x384xbf16, #tpu.memory_space<vmem>>, %arg4: memref<1x384x128xbf16, #tpu.memory_space<vmem>>, %arg5: memref<1x1x128xf32, #tpu.memory_space<vmem>>, %arg6: memref<1x128x128xbf16, #tpu.memory_space<vmem>>) attributes {dimension_semantics = [#tpu.dimension_semantics<parallel>, #tpu.dimension_semantics<parallel>, #tpu.dimension_semantics<parallel>], iteration_bounds = array<i64: 1, 1, 1>, scalar_prefetch = 0 : i64, scratch_operands = 0 : i64, tpu.core_type = #tpu.core_type<tc>, window_params = [{transform_indices = @transform_0, window_bounds = array<i64: 1, 128, 384>}, {transform_indices = @transform_1, window_bounds = array<i64: 1, 384, 128>}, {transform_indices = @transform_2, window_bounds = array<i64: 1, 1, 128>}, {transform_indices = @transform_3, window_bounds = array<i64: 1, 128, 128>}]} {
    %c0 = arith.constant 0 : index
    %c0_0 = arith.constant 0 : index
    %c0_1 = arith.constant 0 : index
    %0 = vector.load %arg3[%c0, %c0_0, %c0_1] : memref<1x128x384xbf16, #tpu.memory_space<vmem>>, vector<1x128x384xbf16>
    %1 = vector.shape_cast %0 : vector<1x128x384xbf16> to vector<128x384xbf16>
    %c0_2 = arith.constant 0 : index
    %c0_3 = arith.constant 0 : index
    %c0_4 = arith.constant 0 : index
    %2 = vector.load %arg4[%c0_2, %c0_3, %c0_4] : memref<1x384x128xbf16, #tpu.memory_space<vmem>>, vector<1x384x128xbf16>
    %3 = vector.shape_cast %2 : vector<1x384x128xbf16> to vector<384x128xbf16>
    %cst = arith.constant dense<0.000000e+00> : vector<128x128xf32>
    %4 = tpu.matmul %1, %3, %cst {dimension_numbers = #tpu.dot_dimension_numbers<[1], [0], [0], [1], [0, 0, 1, 1], [], []>} : vector<128x384xbf16>, vector<384x128xbf16>, vector<128x128xf32> -> vector<128x128xf32>
    %c0_5 = arith.constant 0 : index
    %c0_6 = arith.constant 0 : index
    %c0_7 = arith.constant 0 : index
    %5 = vector.load %arg5[%c0_5, %c0_6, %c0_7] : memref<1x1x128xf32, #tpu.memory_space<vmem>>, vector<1x1x128xf32>
    %6 = vector.shape_cast %5 : vector<1x1x128xf32> to vector<1x128xf32>
    %7 = vector.broadcast %6 : vector<1x128xf32> to vector<128x128xf32>
    %8 = arith.addf %4, %7 : vector<128x128xf32>
    %cst_8 = arith.constant 0.000000e+00 : f32
    %9 = vector.broadcast %cst_8 : f32 to vector<128x128xf32>
    %10 = arith.cmpf oge, %8, %9 : vector<128x128xf32>
    %cst_9 = arith.constant 1.000000e-01 : f32
    %11 = vector.broadcast %cst_9 : f32 to vector<128x128xf32>
    %12 = arith.mulf %11, %8 : vector<128x128xf32>
    %13 = arith.select %10, %8, %12 : vector<128x128xi1>, vector<128x128xf32>
    %14 = arith.truncf %13 : vector<128x128xf32> to vector<128x128xbf16>
    %c0_10 = arith.constant 0 : index
    %c0_11 = arith.constant 0 : index
    %c0_12 = arith.constant 0 : index
    %15 = vector.load %arg6[%c0_10, %c0_11, %c0_12] : memref<1x128x128xbf16, #tpu.memory_space<vmem>>, vector<1x128x128xbf16>
    %16 = vector.shape_cast %15 : vector<1x128x128xbf16> to vector<128x128xbf16>
    %17 = vector.shape_cast %14 : vector<128x128xbf16> to vector<1x128x128xbf16>
    tpu.vector_store %arg6[%c0_10, %c0_11, %c0_12], %17 {strides = array<i32>} : memref<1x128x128xbf16, #tpu.memory_space<vmem>>, vector<1x128x128xbf16>,
    return
  }
  func.func @transform_0(%arg0: i32, %arg1: i32, %arg2: i32) -> (i32, i32, i32) {
    %c0_i32 = arith.constant 0 : i32
    %c0_i32_0 = arith.constant 0 : i32
    return %arg0, %arg2, %c0_i32 : i32, i32, i32
  }
  func.func @transform_1(%arg0: i32, %arg1: i32, %arg2: i32) -> (i32, i32, i32) {
    %c0_i32 = arith.constant 0 : i32
    %c0_i32_0 = arith.constant 0 : i32
    return %arg0, %c0_i32, %arg1 : i32, i32, i32
  }
  func.func @transform_2(%arg0: i32, %arg1: i32, %arg2: i32) -> (i32, i32, i32) {
    %c0_i32 = arith.constant 0 : i32
    %c0_i32_0 = arith.constant 0 : i32
    return %arg0, %c0_i32, %arg1 : i32, i32, i32
  }
  func.func @transform_3(%arg0: i32, %arg1: i32, %arg2: i32) -> (i32, i32, i32) {
    %c0_i32 = arith.constant 0 : i32
    return %arg0, %arg2, %arg1 : i32, i32, i32
  }
}

</mosaic_0001>

<bundles_post_ra>
// kernel: tpu_custom_call.1
= control target key start
LH: loop header
LB: loop body
LE: loop exit
PB: predicated region body
PF: predicated region fallthrough
CT: control target
= control target key end

     0   :  { %8 = vsyncpa [#allocation3], 0  ;;  %s1175_s0 = inlined_call_operand.hbm [shape: bf16[1,128,384], index: 0, kind: input, shape index: {}]   ;;  %s1176_s1 = inlined_call_operand.hbm [shape: bf16[1,384,128], index: 1, kind: input, shape index: {}]   ;;  %s1177_s2 = inlined_call_operand.vmem [shape: f32[1,1,128], index: 2, kind: input, shape index: {}]   ;;  %s1178_s3 = inlined_call_operand.hbm [shape: bf16[1,128,128], index: 3, kind: output, shape index: {}]  }
   0x1   :  { %9 = vsyncpa [#allocation6], 0 }
   0x2   :  { %10 = vsyncpa [#allocation4], 0  ;;  %s1112_s12 = smov [#allocation2]  }
   0x3   :  { %s16_s13 = sshll.u32 %s1112_s12, 4  ;;  %s17_s13 = int_to_ptr.vmem [resolvable:$true] %s16_s13 }
   0x4   :  { %s1054_s14 = scalar_lea.vmem %s17_s13, 3072  ;;  %p1059_p1 = scmp.lt.s32.totalorder %s17_s13, %s17_s13 }
   0x5   :  { %p1055_p0 = scmp.ne.s32.totalorder %s17_s13, %s1054_s14  ;;  %p1060_p2 = scmp.lt.s32.totalorder %s1054_s14, %s1054_s14 }
   0x7   :  { %p1061_p3 = por %p1060_p2, %p1059_p1 }
   0x9   :  { %p1062_p4 = pnand %p1061_p3, %p1055_p0 }
   0xb   :  { %1065 = shalt.err (!%p1062_p4)
}
   0xc   :  { %s1113_s15 = smov 192   ;;  %s1114_s16 = smov 12  }
   0xd   :  { %22 = dma.hbm_to_vmem [thread:$0]  %s1175_s0, 3072, %s17_s13, [#allocation3], %s1113_s15, %s1113_s15, %s1114_s16  }
   0xe   :  { %s1115_s19 = smov [#allocation5]  }
   0xf   :  { %s28_s20 = sshll.u32 %s1115_s19, 4  ;;  %s29_s20 = int_to_ptr.vmem [resolvable:$true] %s28_s20 }
  0x10   :  { %s1074_s21 = scalar_lea.vmem %s29_s20, 3072  ;;  %p1079_p6 = scmp.lt.s32.totalorder %s29_s20, %s29_s20 }
  0x11   :  { %p1075_p5 = scmp.ne.s32.totalorder %s29_s20, %s1074_s21  ;;  %p1080_p7 = scmp.lt.s32.totalorder %s1074_s21, %s1074_s21 }
  0x13   :  { %p1081_p8 = por %p1080_p7, %p1079_p6 }
  0x15   :  { %p1082_p9 = pnand %p1081_p8, %p1075_p5 }
  0x17   :  { %1085 = shalt.err (!%p1082_p9)
}
  0x18   :  { %s1116_s22 = smov 64   ;;  %s1117_s23 = smov 4  }
  0x19   :  { %34 = dma.hbm_to_vmem [thread:$0]  %s1176_s1, 3072, %s29_s20, [#allocation6], %s1116_s22, %s1116_s22, %s1117_s23  }
  0x1a   :  { %1106 = dma.done.wait [#allocation3], 3072  }
  0x1b   :  { %1107 = vsyncadd [#allocation3], 4294964224 }
  0x1c   :  { %1108 = dma.done.wait [#allocation6], 3072  }
  0x1d   :  { %1109 = vsyncadd [#allocation6], 4294964224  ;;  %v990_v0 = vld [vmem:[#allocation5 + $0x78] sm:$0xff]   ;;  %v992_v2 = vld [vmem:[#allocation5 + $0x70] sm:$0xff]  }
  0x1e   :  { %v991_v1 = vld [vmem:[#allocation5 + $0x38] sm:$0xff]   ;;  %871 = vmatprep.subr.bf16.mxu0 %v990_v0  ;;  %v994_v4 = vld [vmem:[#allocation5 + $0x30] sm:$0xff]   ;;  %v995_v5 = vld [vmem:[#allocation5 + $0x68] sm:$0xff]  }
  0x1f   :  { %872 = vmatpush3.bf16.msra.mxu0 %v991_v1  ;;  %v993_v3 = vld [vmem:[#allocation5 + $0xb8] sm:$0xff]   ;;  %v996_v6 = vld [vmem:[#allocation5 + $0xb0] sm:$0xff]   ;;  %v997_v7 = vld [vmem:[#allocation5 + $0x28] sm:$0xff]  }
  0x20   :  { %873 = vmatprep.subr.bf16.mxu0 %v992_v2  ;;  %951 = vmatprep.subr.bf16.mxu1 %v993_v3  ;;  %v998_v8 = vld [vmem:[#allocation5 + $0x60] sm:$0xff]   ;;  %v999_v9 = vld [vmem:[#allocation5 + $0xa8] sm:$0xff]   ;;  %v1001_v11 = vld [vmem:[#allocation5 + $0x58] sm:$0xff]  }
  0x21   :  { %952 = vmatpush3.bf16.msra.mxu1 %v993_v3  ;;  %v1000_v10 = vld [vmem:[#allocation5 + $0x20] sm:$0xff]   ;;  %v1003_v13 = vld [vmem:[#allocation5 + $0x18] sm:$0xff]   ;;  %v1004_v15 = vld [vmem:[#allocation5 + $0x50] sm:$0xff]  }
  0x22   :  { %953 = vmatprep.subr.bf16.mxu1 %v996_v6  ;;  %v1002_v12 = vld [vmem:[#allocation5 + $0xa0] sm:$0xff]   ;;  %v1005_v14 = vld [vmem:[#allocation5 + $0x98] sm:$0xff]   ;;  %v1006_v16 = vld [vmem:[#allocation5 + $0x10] sm:$0xff]  }
  0x23   :  { %874 = vmatpush3.bf16.msra.mxu0 %v994_v4  ;;  %v1008_v17 = vld [vmem:[#allocation5 + $0x90] sm:$0xff]   ;;  %v1007_v18 = vld [vmem:[#allocation5 + $0x48] sm:$0xff]   ;;  %v1010_v20 = vld [vmem:[#allocation5 + $0x40] sm:$0xff]  }
  0x24   :  { %875 = vmatprep.subr.bf16.mxu0 %v995_v5  ;;  %v1009_v19 = vld [vmem:[#allocation5 + $0x8] sm:$0xff]   ;;  %v1015_v22 = vld [vmem:[#allocation2 + $0x4] ss:$12 sps:$4 sm:$0xff]   ;;  %v1022_v31 = vld [vmem:[#allocation2 + $0x34] ss:$12 sps:$4 sm:$0xff]  }
  0x25   :  { %954 = vmatpush3.bf16.msra.mxu1 %v996_v6  ;;  %v1011_v21 = vld [vmem:[#allocation5 + $0x88] sm:$0xff]   ;;  %v1012_v23 = vld [vmem:[#allocation5] sm:$0xff]   ;;  %435 = vmatprep.mubr.bf16.mxu0 %v1015_v22  ;;  %v1026_v32 = vld [vmem:[#allocation2 + $0x50] ss:$12 sps:$4 sm:$0xff]  }
  0x26   :  { %955 = vmatprep.subr.bf16.mxu1 %v999_v9  ;;  %v1017_v24 = vld [vmem:[#allocation2 + $0x8] ss:$12 sps:$4 sm:$0xff]   ;;  %v1016_v25 = vld [vmem:[#allocation5 + $0x80] sm:$0xff]   ;;  %v1024_v34 = vld [vmem:[#allocation2 + $0x30] ss:$12 sps:$4 sm:$0xff]  }
  0x27   :  { %876 = vmatpush3.bf16.msra.mxu0 %v997_v7  ;;  %967 = vmatprep.mubr.bf16.mxu1 %v1017_v24  ;;  %v1013_v26 = vld [vmem:[#allocation2] ss:$12 sps:$4 sm:$0xff]   ;;  %v1019_v27 = vld [vmem:[#allocation2 + $0x1c] ss:$12 sps:$4 sm:$0xff]   ;;  %v1025_v29 = vld [vmem:[#allocation2 + $0x38] ss:$12 sps:$4 sm:$0xff]  }
  0x28   :  { %877 = vmatprep.subr.bf16.mxu0 %v998_v8  ;;  %v1018_v28 = vld [vmem:[#allocation2 + $0x20] ss:$12 sps:$4 sm:$0xff]   ;;  %v1021_v30 = vld [vmem:[#allocation2 + $0x18] ss:$12 sps:$4 sm:$0xff]   ;;  %v1033_v33 = vld [vmem:[#allocation2 + $0x68] ss:$12 sps:$4 sm:$0xff]  }
  0x29   :  { %956 = vmatpush3.bf16.msra.mxu1 %v999_v9  ;;  %v1027_v35 = vld [vmem:[#allocation2 + $0x4c] ss:$12 sps:$4 sm:$0xff]   ;;  %v1029_v38 = vld [vmem:[#allocation2 + $0x48] ss:$12 sps:$4 sm:$0xff]   ;;  %v1030_v39 = vld [vmem:[#allocation2 + $0x64] ss:$12 sps:$4 sm:$0xff]  }
  0x2a   :  { %957 = vmatprep.subr.bf16.mxu1 %v1002_v12  ;;  %v1034_v36 = vld [vmem:[#allocation2 + $0x80] ss:$12 sps:$4 sm:$0xff]   ;;  %v1041_v37 = vld [vmem:[#allocation2 + $0x98] ss:$12 sps:$4 sm:$0xff]   ;;  %v1042_v40 = vld [vmem:[#allocation2 + $0xb0] ss:$12 sps:$4 sm:$0xff]  }
  0x2b   :  { %878 = vmatpush3.bf16.msra.mxu0 %v1000_v10  ;;  %v1032_v41 = vld [vmem:[#allocation2 + $0x60] ss:$12 sps:$4 sm:$0xff]   ;;  %v1035_v42 = vld [vmem:[#allocation2 + $0x7c] ss:$12 sps:$4 sm:$0xff]   ;;  %v1037_v43 = vld [vmem:[#allocation2 + $0x78] ss:$12 sps:$4 sm:$0xff]  }
  0x2c   :  { %879 = vmatprep.subr.bf16.mxu0 %v1001_v11  ;;  %v1038_v44 = vld [vmem:[#allocation2 + $0x94] ss:$12 sps:$4 sm:$0xff]   ;;  %v1040_v45 = vld [vmem:[#allocation2 + $0x90] ss:$12 sps:$4 sm:$0xff]   ;;  %v1043_v46 = vld [vmem:[#allocation2 + $0xac] ss:$12 sps:$4 sm:$0xff]  }
  0x2d   :  { %958 = vmatpush3.bf16.msra.mxu1 %v1002_v12  ;;  %v1045_v47 = vld [vmem:[#allocation2 + $0xa8] ss:$12 sps:$4 sm:$0xff]   ;;  %v1151_v50 = vld [vmem:[%s1177_s2] ss:$0 sm:$0xff]  ;;  %s1118_s2 = smov [#allocation7]  }
  0x2e   :  { %959 = vmatprep.subr.bf16.mxu1 %v1005_v14  ;;  %s730_s26 = sshll.u32 %s1118_s2, 4  ;;  %s731_s26 = int_to_ptr.vmem [resolvable:$true] %s730_s26 }
  0x2f   :  { %880 = vmatpush3.bf16.msra.mxu0 %v1003_v13  ;;  %s1086_s27 = scalar_lea.vmem %s731_s26, 1024  ;;  %p1091_p11 = scmp.lt.s32.totalorder %s731_s26, %s731_s26 }
  0x30   :  { %881 = vmatprep.subr.bf16.mxu0 %v1004_v15  ;;  %p1087_p10 = scmp.ne.s32.totalorder %s731_s26, %s1086_s27  ;;  %p1092_p12 = scmp.lt.s32.totalorder %s1086_s27, %s1086_s27 }
  0x31   :  { %960 = vmatpush3.bf16.msra.mxu1 %v1005_v14 }
  0x32   :  { %961 = vmatprep.subr.bf16.mxu1 %v1008_v17  ;;  %p1093_p13 = por %p1092_p12, %p1091_p11 }
  0x33   :  { %882 = vmatpush3.bf16.msra.mxu0 %v1006_v16 }
  0x34   :  { %883 = vmatprep.subr.bf16.mxu0 %v1007_v18  ;;  %p1094_p0 = pnand %p1093_p13, %p1087_p10 }
  0x35   :  { %962 = vmatpush3.bf16.msra.mxu1 %v1008_v17 }
  0x36   :  { %963 = vmatprep.subr.bf16.mxu1 %v1011_v21 }
  0x37   :  { %884 = vmatpush3.bf16.msra.mxu0 %v1009_v19 }
  0x38   :  { %885 = vmatprep.subr.bf16.mxu0 %v1010_v20 }
  0x39   :  { %964 = vmatpush3.bf16.msra.mxu1 %v1011_v21 }
  0x3a   :  { %965 = vmatprep.subr.bf16.mxu1 %v1016_v25 }
  0x3b   :  { %886 = vmatpush3.bf16.msra.mxu0 %v1012_v23 }
  0x3d   :  { %966 = vmatpush3.bf16.msra.mxu1 %v1016_v25 }
  0x3e   :  { %436 = vmatmul.mubr.bf16.vlgmr.msra.gmra.mxu0 %v1013_v26 }
  0x3f   :  { %443 = vmatprep.mubr.bf16.mxu0 %v1019_v27 }
  0x40   :  { %968 = vmatmul.mubr.bf16.vlgmr.msra.gmra.mxu1 %v1018_v28 }
  0x41   :  { %971 = vmatprep.mubr.bf16.mxu1 %v1025_v29 }
  0x46   :  { %444 = vmatmul.mubr.bf16.gmra.mxu0 %v1021_v30 }
  0x47   :  { %451 = vmatprep.mubr.bf16.mxu0 %v1022_v31 }
  0x48   :  { %972 = vmatmul.mubr.bf16.gmra.mxu1 %v1026_v32 }
  0x49   :  { %975 = vmatprep.mubr.bf16.mxu1 %v1033_v33 }
  0x4e   :  { %452 = vmatmul.mubr.bf16.gmra.mxu0 %v1024_v34 }
  0x4f   :  { %459 = vmatprep.mubr.bf16.mxu0 %v1027_v35 }
  0x50   :  { %976 = vmatmul.mubr.bf16.gmra.mxu1 %v1034_v36 }
  0x51   :  { %979 = vmatprep.mubr.bf16.mxu1 %v1041_v37 }
  0x56   :  { %460 = vmatmul.mubr.bf16.gmra.mxu0 %v1029_v38 }
  0x57   :  { %467 = vmatprep.mubr.bf16.mxu0 %v1030_v39 }
  0x58   :  { %980 = vmatmul.mubr.bf16.gmra.mxu1 %v1042_v40 }
  0x5e   :  { %468 = vmatmul.mubr.bf16.gmra.mxu0 %v1032_v41 }
  0x5f   :  { %475 = vmatprep.mubr.bf16.mxu0 %v1035_v42 }
  0x66   :  { %476 = vmatmul.mubr.bf16.gmra.mxu0 %v1037_v43 }
  0x67   :  { %483 = vmatprep.mubr.bf16.mxu0 %v1038_v44 }
  0x6e   :  { %484 = vmatmul.mubr.bf16.gmra.mxu0 %v1040_v45 }
  0x6f   :  { %491 = vmatprep.mubr.bf16.mxu0 %v1043_v46 }
  0x76   :  { %492 = vmatmul.mubr.bf16.gmra.mxu0 %v1045_v47 }
  0xfe   :  { %v887_v48 = vpop.f32.mrf.mxu0 }
 0x100   :  { %v888_v49 = vpop.f32.mrf.mxu0  ;;  %v969_v52 = vpop.f32.mrf.mxu1 }
 0x101   :  { %v889_v51 = vadd.f32 %v888_v49, %v887_v48 }
 0x102   :  { %v890_v53 = vpop.f32.mrf.mxu0  ;;  %v534_v55 = vpop.f32.mrf.mxu1 }
 0x103   :  { %v438_v54 = vadd.f32 %v889_v51, %v1151_v50 }
 0x104   :  { %v891_v56 = vpop.f32.mrf.mxu0  ;;  %v970_v59 = vpop.f32.mrf.mxu1 }
 0x105   :  { %v892_v57 = vadd.f32 %v891_v56, %v890_v53  ;;  %v535_v58 = vadd.f32 %v534_v55, %v438_v54 }
 0x106   :  { %v893_v60 = vpop.f32.mrf.mxu0  ;;  %v537_v62 = vpop.f32.mrf.mxu1 }
 0x107   :  { %v441_v61 = vadd.f32 %v892_v57, %v1151_v50  ;;  %v613_v0 = vmul.f32 0.1, %v535_v58  ;;  %vm597_vm0 = vcmp.ge.f32.partialorder %v535_v58, 0.0 }
 0x108   :  { %v894_v63 = vpop.f32.mrf.mxu0  ;;  %v973_v4 = vpop.f32.mrf.mxu1 }
 0x109   :  { %v895_v1 = vadd.f32 %v894_v63, %v893_v60  ;;  %v538_v2 = vadd.f32 %v537_v62, %v441_v61  ;;  %v629_v8 = vsel %vm597_vm0, %v535_v58, %v613_v0 }
 0x10a   :  { %v896_v3 = vpop.f32.mrf.mxu0  ;;  %v550_v14 = vpop.f32.mrf.mxu1 }
 0x10b   :  { %v446_v5 = vadd.f32 %v895_v1, %v1151_v50  ;;  %vm598_vm1 = vcmp.ge.f32.partialorder %v538_v2, 0.0  ;;  %v614_v6 = vmul.f32 0.1, %v538_v2 }
 0x10c   :  { %v897_v7 = vpop.f32.mrf.mxu0  ;;  %v974_v21 = vpop.f32.mrf.mxu1 }
 0x10d   :  { %v543_v9 = vadd.f32 %v969_v52, %v446_v5  ;;  %v630_v10 = vsel %vm598_vm1, %v538_v2, %v614_v6  ;;  %v898_v11 = vadd.f32 %v897_v7, %v896_v3 }
 0x10e   :  { %v827_v12 = vpack.c.bf16 %v630_v10, %v629_v8  ;;  %v899_v13 = vpop.f32.mrf.mxu0  ;;  %v553_v31 = vpop.f32.mrf.mxu1 }
 0x10f   :  { %v449_v15 = vadd.f32 %v898_v11, %v1151_v50  ;;  %v615_v17 = vmul.f32 0.1, %v543_v9  ;;  %vm599_vm2 = vcmp.ge.f32.partialorder %v543_v9, 0.0 }
 0x110   :  { %828 = vst [vmem:[#allocation7] sm:$0xff] %v827_v12   ;;  %v900_v16 = vpop.f32.mrf.mxu0  ;;  %v977_v38 = vpop.f32.mrf.mxu1 }
 0x111   :  { %v546_v18 = vadd.f32 %v970_v59, %v449_v15  ;;  %v901_v19 = vadd.f32 %v900_v16, %v899_v13  ;;  %v631_v25 = vsel %vm599_vm2, %v543_v9, %v615_v17 }
 0x112   :  { %v902_v20 = vpop.f32.mrf.mxu0  ;;  %v566_v48 = vpop.f32.mrf.mxu1 }
 0x113   :  { %vm600_vm3 = vcmp.ge.f32.partialorder %v546_v18, 0.0  ;;  %v616_v22 = vmul.f32 0.1, %v546_v18  ;;  %v454_v23 = vadd.f32 %v901_v19, %v1151_v50 }
 0x114   :  { %v903_v24 = vpop.f32.mrf.mxu0  ;;  %v978_v56 = vpop.f32.mrf.mxu1 }
 0x115   :  { %v632_v26 = vsel %vm600_vm3, %v546_v18, %v616_v22  ;;  %v904_v27 = vadd.f32 %v903_v24, %v902_v20  ;;  %v551_v28 = vadd.f32 %v550_v14, %v454_v23 }
 0x116   :  { %v832_v29 = vpack.c.bf16 %v632_v26, %v631_v25  ;;  %v905_v30 = vpop.f32.mrf.mxu0  ;;  %v569_v2 = vpop.f32.mrf.mxu1 }
 0x117   :  { %v457_v32 = vadd.f32 %v904_v27, %v1151_v50  ;;  %v617_v34 = vmul.f32 0.1, %v551_v28  ;;  %vm601_vm4 = vcmp.ge.f32.partialorder %v551_v28, 0.0 }
 0x118   :  { %864 = vst [vmem:[#allocation7 + $0x8] sm:$0xff] %v832_v29   ;;  %v906_v33 = vpop.f32.mrf.mxu0  ;;  %v981_v9 = vpop.f32.mrf.mxu1 }
 0x119   :  { %v907_v35 = vadd.f32 %v906_v33, %v905_v30  ;;  %v554_v36 = vadd.f32 %v553_v31, %v457_v32  ;;  %v633_v42 = vsel %vm601_vm4, %v551_v28, %v617_v34 }
 0x11a   :  { %v908_v37 = vpop.f32.mrf.mxu0  ;;  %v582_v19 = vpop.f32.mrf.mxu1 }
 0x11b   :  { %v462_v39 = vadd.f32 %v907_v35, %v1151_v50  ;;  %vm602_vm5 = vcmp.ge.f32.partialorder %v554_v36, 0.0  ;;  %v618_v40 = vmul.f32 0.1, %v554_v36 }
 0x11c   :  { %v909_v41 = vpop.f32.mrf.mxu0  ;;  %v982_v26 = vpop.f32.mrf.mxu1 }
 0x11d   :  { %v559_v43 = vadd.f32 %v973_v4, %v462_v39  ;;  %v634_v44 = vsel %vm602_vm5, %v554_v36, %v618_v40  ;;  %v910_v45 = vadd.f32 %v909_v41, %v908_v37 }
 0x11e   :  { %v837_v46 = vpack.c.bf16 %v634_v44, %v633_v42  ;;  %v911_v47 = vpop.f32.mrf.mxu0  ;;  %v585_v36 = vpop.f32.mrf.mxu1 }
 0x11f   :  { %v465_v49 = vadd.f32 %v910_v45, %v1151_v50  ;;  %v619_v52 = vmul.f32 0.1, %v559_v43  ;;  %vm603_vm6 = vcmp.ge.f32.partialorder %v559_v43, 0.0 }
 0x120   :  { %865 = vst [vmem:[#allocation7 + $0x10] sm:$0xff] %v837_v46   ;;  %v912_v51 = vpop.f32.mrf.mxu0 }
 0x121   :  { %v562_v53 = vadd.f32 %v974_v21, %v465_v49  ;;  %v913_v54 = vadd.f32 %v912_v51, %v911_v47  ;;  %v635_v60 = vsel %vm603_vm6, %v559_v43, %v619_v52 }
 0x122   :  { %v914_v55 = vpop.f32.mrf.mxu0 }
 0x123   :  { %vm604_vm7 = vcmp.ge.f32.partialorder %v562_v53, 0.0  ;;  %v620_v57 = vmul.f32 0.1, %v562_v53  ;;  %v470_v58 = vadd.f32 %v913_v54, %v1151_v50 }
 0x124   :  { %v915_v59 = vpop.f32.mrf.mxu0 }
 0x125   :  { %v636_v61 = vsel %vm604_vm7, %v562_v53, %v620_v57  ;;  %v916_v62 = vadd.f32 %v915_v59, %v914_v55  ;;  %v567_v63 = vadd.f32 %v566_v48, %v470_v58 }
 0x126   :  { %v842_v0 = vpack.c.bf16 %v636_v61, %v635_v60  ;;  %v917_v1 = vpop.f32.mrf.mxu0 }
 0x127   :  { %v473_v3 = vadd.f32 %v916_v62, %v1151_v50  ;;  %v621_v5 = vmul.f32 0.1, %v567_v63  ;;  %vm605_vm8 = vcmp.ge.f32.partialorder %v567_v63, 0.0 }
 0x128   :  { %866 = vst [vmem:[#allocation7 + $0x18] sm:$0xff] %v842_v0   ;;  %v918_v4 = vpop.f32.mrf.mxu0 }
 0x129   :  { %v919_v6 = vadd.f32 %v918_v4, %v917_v1  ;;  %v570_v7 = vadd.f32 %v569_v2, %v473_v3  ;;  %v637_v13 = vsel %vm605_vm8, %v567_v63, %v621_v5 }
 0x12a   :  { %v920_v8 = vpop.f32.mrf.mxu0 }
 0x12b   :  { %v478_v10 = vadd.f32 %v919_v6, %v1151_v50  ;;  %vm606_vm9 = vcmp.ge.f32.partialorder %v570_v7, 0.0  ;;  %v622_v11 = vmul.f32 0.1, %v570_v7 }
 0x12c   :  { %v921_v12 = vpop.f32.mrf.mxu0 }
 0x12d   :  { %v575_v14 = vadd.f32 %v977_v38, %v478_v10  ;;  %v638_v15 = vsel %vm606_vm9, %v570_v7, %v622_v11  ;;  %v922_v16 = vadd.f32 %v921_v12, %v920_v8 }
 0x12e   :  { %v847_v17 = vpack.c.bf16 %v638_v15, %v637_v13  ;;  %v923_v18 = vpop.f32.mrf.mxu0 }
 0x12f   :  { %v481_v20 = vadd.f32 %v922_v16, %v1151_v50  ;;  %v623_v22 = vmul.f32 0.1, %v575_v14  ;;  %vm607_vm10 = vcmp.ge.f32.partialorder %v575_v14, 0.0 }
 0x130   :  { %867 = vst [vmem:[#allocation7 + $0x20] sm:$0xff] %v847_v17   ;;  %v924_v21 = vpop.f32.mrf.mxu0 }
 0x131   :  { %v578_v23 = vadd.f32 %v978_v56, %v481_v20  ;;  %v925_v24 = vadd.f32 %v924_v21, %v923_v18  ;;  %v639_v30 = vsel %vm607_vm10, %v575_v14, %v623_v22 }
 0x132   :  { %v926_v25 = vpop.f32.mrf.mxu0 }
 0x133   :  { %vm608_vm11 = vcmp.ge.f32.partialorder %v578_v23, 0.0  ;;  %v624_v27 = vmul.f32 0.1, %v578_v23  ;;  %v486_v28 = vadd.f32 %v925_v24, %v1151_v50 }
 0x134   :  { %v927_v29 = vpop.f32.mrf.mxu0 }
 0x135   :  { %v640_v31 = vsel %vm608_vm11, %v578_v23, %v624_v27  ;;  %v928_v32 = vadd.f32 %v927_v29, %v926_v25  ;;  %v583_v33 = vadd.f32 %v582_v19, %v486_v28 }
 0x136   :  { %v852_v34 = vpack.c.bf16 %v640_v31, %v639_v30  ;;  %v929_v35 = vpop.f32.mrf.mxu0 }
 0x137   :  { %v489_v37 = vadd.f32 %v928_v32, %v1151_v50  ;;  %v625_v39 = vmul.f32 0.1, %v583_v33  ;;  %vm609_vm12 = vcmp.ge.f32.partialorder %v583_v33, 0.0 }
 0x138   :  { %868 = vst [vmem:[#allocation7 + $0x28] sm:$0xff] %v852_v34   ;;  %v930_v38 = vpop.f32.mrf.mxu0 }
 0x139   :  { %v931_v40 = vadd.f32 %v930_v38, %v929_v35  ;;  %v586_v41 = vadd.f32 %v585_v36, %v489_v37  ;;  %v641_v46 = vsel %vm609_vm12, %v583_v33, %v625_v39 }
 0x13a   :  { %v932_v42 = vpop.f32.mrf.mxu0 }
 0x13b   :  { %v494_v43 = vadd.f32 %v931_v40, %v1151_v50  ;;  %vm610_vm13 = vcmp.ge.f32.partialorder %v586_v41, 0.0  ;;  %v626_v44 = vmul.f32 0.1, %v586_v41 }
 0x13c   :  { %v933_v45 = vpop.f32.mrf.mxu0 }
 0x13d   :  { %v591_v47 = vadd.f32 %v981_v9, %v494_v43  ;;  %v642_v48 = vsel %vm610_vm13, %v586_v41, %v626_v44  ;;  %v934_v49 = vadd.f32 %v933_v45, %v932_v42 }
 0x13e   :  { %v857_v51 = vpack.c.bf16 %v642_v48, %v641_v46 }
 0x13f   :  { %v497_v52 = vadd.f32 %v934_v49, %v1151_v50  ;;  %v627_v53 = vmul.f32 0.1, %v591_v47  ;;  %vm611_vm14 = vcmp.ge.f32.partialorder %v591_v47, 0.0 }
 0x140   :  { %869 = vst [vmem:[#allocation7 + $0x30] sm:$0xff] %v857_v51  }
 0x141   :  { %v594_v54 = vadd.f32 %v982_v26, %v497_v52  ;;  %v643_v56 = vsel %vm611_vm14, %v591_v47, %v627_v53 }
 0x143   :  { %vm612_vm15 = vcmp.ge.f32.partialorder %v594_v54, 0.0  ;;  %v628_v55 = vmul.f32 0.1, %v594_v54 }
 0x145   :  { %v644_v57 = vsel %vm612_vm15, %v594_v54, %v628_v55 }
 0x146   :  { %v862_v58 = vpack.c.bf16 %v644_v57, %v643_v56 }
 0x148   :  { %870 = vst [vmem:[#allocation7 + $0x38] sm:$0xff] %v862_v58  }
 0x149   :  { %1097 = shalt.err (!%p1094_p0)
}
 0x14a   :  { %736 = dma.vmem_to_hbm [thread:$0]  %s731_s26, 1024, %s1178_s3, [#allocation4], %s1116_s22, %s1116_s22, %s1117_s23  }
 0x14b   :  { %1110 = dma.done.wait [#allocation4], 1024  }
 0x14c   :  { %1111 = vsyncadd [#allocation4], 4294966272 }
 0x14d   :  { %740 = vsyncpa [#allocation3], 1 }
 0x14e   :  { %741 = vsyncpa [#allocation6], 1 }
 0x14f   :  { %742 = vsyncpa [#allocation4], 1 }

</bundles_post_ra>
